<compile_context>
chip_gen: v7x
topology: tpu7x:2x2x1
jax: 0.10.0
libtpu: 0.0.40
codegen_flags: <defaults>
</compile_context>

<pallas_src>
import functools
import math

import jax
import jax.numpy as jnp
from jax.experimental import pallas as pl
from jax.experimental.pallas import tpu as pltpu


_GELU_C = math.sqrt(2.0 / math.pi)


def _round_up(a, b):
    return (a + b - 1) // b * b


def _new_gelu(h):
    # NewGELU: 0.5*h*(1 + tanh(sqrt(2/pi)*(h + 0.044715*h^3))); cube via
    # multiplies (VPU) rather than pow (log/exp lowering, NaN risk for h<0).
    return 0.5 * h * (1.0 + jnp.tanh(_GELU_C * (h + 0.044715 * (h * h * h))))


def _vmem_capacity_bytes():
    try:
        cap = getattr(pltpu.get_tpu_info(), "vmem_capacity_bytes", None)
        if cap:
            return int(cap)
    except Exception:
        pass
    return 64 * 1024 * 1024  # conservative default (v7x per-TensorCore VMEM)


def _supports_single_buffering():
    # Probe whether this JAX version accepts pipeline_mode=pl.Buffered(1).
    try:
        pl.BlockSpec((8, 128), lambda i: (0, 0), pipeline_mode=pl.Buffered(1))
        return True
    except Exception:
        return False


_SINGLE_BUFFER_OK = _supports_single_buffering()


def _aligned_divisors(n, align=128):
    return [d for d in range(align, n + 1, align) if n % d == 0]


def _mlp_kernel_resident(x_ref, w1_ref, b1_ref, w2_ref, b2_ref, o_ref):
    # x_ref:  (TM, E) input dtype   (varies with grid axis 0)
    # w1_ref: (E, I)  bf16 c_fc weight      (grid-constant, VMEM-resident)
    # b1_ref: (1, I)  f32  c_fc bias
    # w2_ref: (I, E)  bf16 c_proj weight    (grid-constant, VMEM-resident)
    # b2_ref: (1, E)  f32  c_proj bias
    # o_ref:  (TM, E) output tile
    x = x_ref[...].astype(w1_ref.dtype)
    h = jnp.dot(x, w1_ref[...], preferred_element_type=jnp.float32) + b1_ref[...]
    g = _new_gelu(h)
    y = jnp.dot(g.astype(w2_ref.dtype), w2_ref[...],
                preferred_element_type=jnp.float32)
    o_ref[...] = (y + b2_ref[...]).astype(o_ref.dtype)


def _mlp_kernel_streamed(x_ref, w1_ref, b1_ref, w2_ref, b2_ref, o_ref, acc_ref):
    # Intermediate dim tiled along grid axis 1 ("arbitrary"); c_proj partials
    # accumulated in an f32 VMEM scratch and finalized on the last I-step.
    j = pl.program_id(1)

    @pl.when(j == 0)
    def _():
        acc_ref[...] = jnp.zeros_like(acc_ref)

    x = x_ref[...].astype(w1_ref.dtype)
    h = jnp.dot(x, w1_ref[...], preferred_element_type=jnp.float32) + b1_ref[...]
    g = _new_gelu(h)
    acc_ref[...] += jnp.dot(g.astype(w2_ref.dtype), w2_ref[...],
                            preferred_element_type=jnp.float32)

    @pl.when(j == pl.num_programs(1) - 1)
    def _():
        o_ref[...] = (acc_ref[...] + b2_ref[...]).astype(o_ref.dtype)


@functools.partial(jax.jit, static_argnames=("tm_resident", "tm_streamed"))
def gpt2_mlp(x, w_fc, b_fc, w_proj, b_proj, *, tm_resident=256, tm_streamed=512):
    """GPT-2 MLP forward.

    x: (B, T, E); w_fc: (E, I); b_fc: (I,); w_proj: (I, E); b_proj: (E,).
    Pass bf16 weights to avoid a per-call HBM cast pass over the weights.
    """
    B, T, E = x.shape
    I = w_fc.shape[1]
    M = B * T

    compute_dtype = jnp.bfloat16
    w1 = w_fc if w_fc.dtype == compute_dtype else w_fc.astype(compute_dtype)
    w2 = w_proj if w_proj.dtype == compute_dtype else w_proj.astype(compute_dtype)
    b1 = b_fc.reshape(1, I).astype(jnp.float32)
    b2 = b_proj.reshape(1, E).astype(jnp.float32)

    out_dtype = x.dtype
    x_bytes = x.dtype.itemsize
    out_bytes = x.dtype.itemsize

    # Per-generation VMEM budget (v7x: 64 MiB physical -> ~51 MB limit;
    # v5e/v6e: 128 MiB physical -> 100 MB limit).
    cap = _vmem_capacity_bytes()
    vmem_limit = min(int(cap * 0.8), 100 * 1024 * 1024)
    budget = int(vmem_limit * 0.9)

    def resident_bytes(tm, weight_bufs):
        return (
            2 * E * I * 2 * weight_bufs       # both bf16 weight matrices
            + tm * E * x_bytes * 2            # x tile, double-buffered
            + tm * E * out_bytes * 2          # out tile, double-buffered
            + 2 * tm * I * 4 + tm * E * 4     # f32 h/g temporaries + c_proj result
            + (I + E) * 4 * 2                 # biases
        )

    def streamed_bytes(tm, ti):
        return (
            2 * E * ti * 2 * 2                # weight slices, double-buffered
            + tm * E * x_bytes * 2
            + tm * E * out_bytes * 2
            + tm * E * 4                      # f32 accumulator scratch
            + 2 * tm * ti * 4                 # f32 h/g temporaries
            + (ti + E) * 4 * 2
        )

    tm_r = min(tm_resident, _round_up(M, 8))

    # Prefer full weight residency (no I-tiling): grid-constant weights are
    # DMA'd from HBM exactly once instead of once per M tile.
    resident = resident_bytes(tm_r, 2) <= budget
    single_buffer_weights = False
    if not resident and _SINGLE_BUFFER_OK and resident_bytes(tm_r, 1) <= budget:
        # Double-buffering a grid-constant block only wastes VMEM; single-buffer
        # the weights to keep residency (matters on v7x's 64 MiB VMEM).
        resident = True
        single_buffer_weights = True

    if resident:
        tm = tm_r
        Mp = _round_up(M, tm)
        x2d = x.reshape(M, E)
        if Mp != M:
            x2d = jnp.pad(x2d, ((0, Mp - M), (0, 0)))

        def const_spec(shape):
            if single_buffer_weights:
                return pl.BlockSpec(shape, lambda i: (0, 0),
                                    pipeline_mode=pl.Buffered(1))
            return pl.BlockSpec(shape, lambda i: (0, 0))

        cost = pl.CostEstimate(
            flops=4 * M * E * I,                       # two matmuls, 2*M*E*I each
            transcendentals=M * I,                     # tanh per intermediate elem
            bytes_accessed=(M * E * x_bytes            # read x once
                            + 4 * E * I                # bf16 weights read once
                            + M * E * out_bytes),      # write out
        )

        out2d = pl.pallas_call(
            _mlp_kernel_resident,
            out_shape=jax.ShapeDtypeStruct((Mp, E), out_dtype),
            grid_spec=pltpu.PrefetchScalarGridSpec(
                num_scalar_prefetch=0,
                grid=(Mp // tm,),
                in_specs=[
                    pl.BlockSpec((tm, E), lambda i: (i, 0)),   # x tile
                    const_spec((E, I)),                        # W_fc (resident)
                    const_spec((1, I)),                        # b_fc
                    const_spec((I, E)),                        # W_proj (resident)
                    const_spec((1, E)),                        # b_proj
                ],
                out_specs=pl.BlockSpec((tm, E), lambda i: (i, 0)),
            ),
            compiler_params=pltpu.CompilerParams(
                dimension_semantics=("parallel",),
                vmem_limit_bytes=vmem_limit,
            ),
            cost_estimate=cost,
        )(x2d, w1, b1, w2, b2)
    else:
        # Streamed regime (very large I on small-VMEM chips): tile the
        # intermediate dim; larger tm so weights are re-streamed fewer times
        # (weight HBM traffic scales with Mp/tm).
        tm = min(tm_streamed, _round_up(M, 8))
        Mp = _round_up(M, tm)
        x2d = x.reshape(M, E)
        if Mp != M:
            x2d = jnp.pad(x2d, ((0, Mp - M), (0, 0)))

        candidates = _aligned_divisors(I)
        ti = I  # I not 128-divisible: cannot tile it cleanly, use full I.
        if candidates:
            fitting = [d for d in candidates if streamed_bytes(tm, d) <= budget]
            ti = max(fitting) if fitting else min(candidates)

        n_m_tiles = Mp // tm
        cost = pl.CostEstimate(
            flops=4 * M * E * I,
            transcendentals=M * I,
            bytes_accessed=(M * E * x_bytes
                            + 4 * E * I * n_m_tiles    # weights re-streamed per M tile
                            + M * E * out_bytes),
        )

        out2d = pl.pallas_call(
            _mlp_kernel_streamed,
            out_shape=jax.ShapeDtypeStruct((Mp, E), out_dtype),
            grid_spec=pltpu.PrefetchScalarGridSpec(
                num_scalar_prefetch=0,
                grid=(Mp // tm, I // ti),
                in_specs=[
                    pl.BlockSpec((tm, E), lambda i, j: (i, 0)),   # x tile
                    pl.BlockSpec((E, ti), lambda i, j: (0, j)),   # W_fc slice
                    pl.BlockSpec((1, ti), lambda i, j: (0, j)),   # b_fc slice
                    pl.BlockSpec((ti, E), lambda i, j: (j, 0)),   # W_proj slice
                    pl.BlockSpec((1, E), lambda i, j: (0, 0)),    # b_proj
                ],
                out_specs=pl.BlockSpec((tm, E), lambda i, j: (i, 0)),
                scratch_shapes=[pltpu.VMEM((tm, E), jnp.float32)],
            ),
            compiler_params=pltpu.CompilerParams(
                dimension_semantics=("parallel", "arbitrary"),
                vmem_limit_bytes=vmem_limit,
            ),
            cost_estimate=cost,
        )(x2d, w1, b1, w2, b2)

    if Mp != M:
        out2d = out2d[:M]
    return out2d.reshape(B, T, E)


def make_conv1d_params(nx, nf, dtype=jnp.float32):
    """Matches get_conv1d_weights: weight[r, c] = c * 0.001, bias = 0."""
    row = jnp.arange(nf, dtype=dtype) * 0.001
    w = jnp.tile(row[None, :], (nx, 1))          # (nx, nf)
    b = jnp.zeros((nf,), dtype=dtype)
    return w, b


def gpt2_mlp_ref(x, w_fc, b_fc, w_proj, b_proj):
    B, T, E = x.shape
    h = x.reshape(-1, E) @ w_fc + b_fc
    h = 0.5 * h * (1.0 + jnp.tanh(_GELU_C * (h + 0.044715 * (h * h * h))))
    y = h @ w_proj + b_proj
    return y.reshape(B, T, E)


if __name__ == "__main__":
    # Small shapes consistent with the module: batch=2, seq=8, embed=32,
    # intermediate=4*embed=128 (GPT-2 convention).
    B, T, E = 2, 8, 32
    I = 4 * E

    key = jax.random.PRNGKey(0)
    x = jax.random.normal(key, (B, T, E), dtype=jnp.float32)

    w_fc_f32, b_fc = make_conv1d_params(E, I)       # c_fc:   Conv1D(nf=I, nx=E)
    w_proj_f32, b_proj = make_conv1d_params(I, E)   # c_proj: Conv1D(nf=E, nx=I)

    # Cast the weights to bf16 once (outside the kernel call) so the wrapper
    # never pays a per-call HBM pass over the weight matrices.
    w_fc = w_fc_f32.astype(jnp.bfloat16)
    w_proj = w_proj_f32.astype(jnp.bfloat16)

    out = gpt2_mlp(x, w_fc, b_fc, w_proj, b_proj)
    out = jax.block_until_ready(out)

    ref = gpt2_mlp_ref(x, w_fc_f32, b_fc, w_proj_f32, b_proj)
    assert out.shape == (B, T, E)
    # bf16 MXU inputs with f32 accumulation -> compare against the f32
    # reference with a bf16-appropriate tolerance.
    assert jnp.allclose(out, ref, atol=5e-2, rtol=5e-2), "mismatch vs reference"

    print("KERNEL_OK")
</pallas_src>

<mosaic_0001>
module attributes {stable_mosaic.version = 11 : i64} {
  func.func @_mlp_kernel_resident(%arg0: i32, %arg1: memref<16x32xf32, #tpu.memory_space<vmem>>, %arg2: memref<32x128xbf16, #tpu.memory_space<vmem>>, %arg3: memref<1x128xf32, #tpu.memory_space<vmem>>, %arg4: memref<128x32xbf16, #tpu.memory_space<vmem>>, %arg5: memref<1x32xf32, #tpu.memory_space<vmem>>, %arg6: memref<16x32xf32, #tpu.memory_space<vmem>>) attributes {dimension_semantics = [#tpu.dimension_semantics<parallel>], iteration_bounds = array<i64: 1>, scalar_prefetch = 0 : i64, scratch_operands = 0 : i64, tpu.core_type = #tpu.core_type<tc>, window_params = [{transform_indices = @transform_0, window_bounds = array<i64: 16, 32>}, {pipeline_mode = #tpu.pipeline_mode<synchronous>, transform_indices = @transform_1, window_bounds = array<i64: 32, 128>}, {pipeline_mode = #tpu.pipeline_mode<synchronous>, transform_indices = @transform_2, window_bounds = array<i64: 1, 128>}, {pipeline_mode = #tpu.pipeline_mode<synchronous>, transform_indices = @transform_3, window_bounds = array<i64: 128, 32>}, {pipeline_mode = #tpu.pipeline_mode<synchronous>, transform_indices = @transform_4, window_bounds = array<i64: 1, 32>}, {transform_indices = @transform_5, window_bounds = array<i64: 16, 32>}]} {
    %c0 = arith.constant 0 : index
    %c0_0 = arith.constant 0 : index
    %0 = vector.load %arg1[%c0, %c0_0] : memref<16x32xf32, #tpu.memory_space<vmem>>, vector<16x32xf32>
    %1 = arith.truncf %0 : vector<16x32xf32> to vector<16x32xbf16>
    %c0_1 = arith.constant 0 : index
    %c0_2 = arith.constant 0 : index
    %2 = vector.load %arg2[%c0_1, %c0_2] : memref<32x128xbf16, #tpu.memory_space<vmem>>, vector<32x128xbf16>
    %cst = arith.constant dense<0.000000e+00> : vector<16x128xf32>
    %3 = tpu.matmul %1, %2, %cst {dimension_numbers = #tpu.dot_dimension_numbers<[1], [0], [0], [1], [0, 0, 1, 1], [], []>} : vector<16x32xbf16>, vector<32x128xbf16>, vector<16x128xf32> -> vector<16x128xf32>
    %c0_3 = arith.constant 0 : index
    %c0_4 = arith.constant 0 : index
    %4 = vector.load %arg3[%c0_3, %c0_4] : memref<1x128xf32, #tpu.memory_space<vmem>>, vector<1x128xf32>
    %5 = vector.broadcast %4 : vector<1x128xf32> to vector<16x128xf32>
    %6 = arith.addf %3, %5 : vector<16x128xf32>
    %cst_5 = arith.constant 5.000000e-01 : f32
    %7 = vector.broadcast %cst_5 : f32 to vector<16x128xf32>
    %8 = arith.mulf %7, %6 : vector<16x128xf32>
    %9 = arith.mulf %6, %6 : vector<16x128xf32>
    %10 = arith.mulf %9, %6 : vector<16x128xf32>
    %cst_6 = arith.constant 4.471500e-02 : f32
    %11 = vector.broadcast %cst_6 : f32 to vector<16x128xf32>
    %12 = arith.mulf %11, %10 : vector<16x128xf32>
    %13 = arith.addf %6, %12 : vector<16x128xf32>
    %cst_7 = arith.constant 0.797884583 : f32
    %14 = vector.broadcast %cst_7 : f32 to vector<16x128xf32>
    %15 = arith.mulf %14, %13 : vector<16x128xf32>
    %16 = math.tanh %15 : vector<16x128xf32>
    %cst_8 = arith.constant 1.000000e+00 : f32
    %17 = vector.broadcast %cst_8 : f32 to vector<16x128xf32>
    %18 = arith.addf %17, %16 : vector<16x128xf32>
    %19 = arith.mulf %8, %18 : vector<16x128xf32>
    %20 = arith.truncf %19 : vector<16x128xf32> to vector<16x128xbf16>
    %c0_9 = arith.constant 0 : index
    %c0_10 = arith.constant 0 : index
    %21 = vector.load %arg4[%c0_9, %c0_10] : memref<128x32xbf16, #tpu.memory_space<vmem>>, vector<128x32xbf16>
    %cst_11 = arith.constant dense<0.000000e+00> : vector<16x32xf32>
    %22 = tpu.matmul %20, %21, %cst_11 {dimension_numbers = #tpu.dot_dimension_numbers<[1], [0], [0], [1], [0, 0, 1, 1], [], []>} : vector<16x128xbf16>, vector<128x32xbf16>, vector<16x32xf32> -> vector<16x32xf32>
    %c0_12 = arith.constant 0 : index
    %c0_13 = arith.constant 0 : index
    %23 = vector.load %arg5[%c0_12, %c0_13] : memref<1x32xf32, #tpu.memory_space<vmem>>, vector<1x32xf32>
    %24 = vector.broadcast %23 : vector<1x32xf32> to vector<16x32xf32>
    %25 = arith.addf %22, %24 : vector<16x32xf32>
    %c0_14 = arith.constant 0 : index
    %c0_15 = arith.constant 0 : index
    %26 = vector.load %arg6[%c0_14, %c0_15] : memref<16x32xf32, #tpu.memory_space<vmem>>, vector<16x32xf32>
    tpu.vector_store %arg6[%c0_14, %c0_15], %25 {strides = array<i32>} : memref<16x32xf32, #tpu.memory_space<vmem>>, vector<16x32xf32>,
    return
  }
  func.func @transform_0(%arg0: i32) -> (i32, i32) {
    %c0_i32 = arith.constant 0 : i32
    %c0_i32_0 = arith.constant 0 : i32
    return %arg0, %c0_i32 : i32, i32
  }
  func.func @transform_1(%arg0: i32) -> (i32, i32) {
    %c0_i32 = arith.constant 0 : i32
    %c0_i32_0 = arith.constant 0 : i32
    %c0_i32_1 = arith.constant 0 : i32
    return %c0_i32, %c0_i32_0 : i32, i32
  }
  func.func @transform_2(%arg0: i32) -> (i32, i32) {
    %c0_i32 = arith.constant 0 : i32
    %c0_i32_0 = arith.constant 0 : i32
    %c0_i32_1 = arith.constant 0 : i32
    return %c0_i32, %c0_i32_0 : i32, i32
  }
  func.func @transform_3(%arg0: i32) -> (i32, i32) {
    %c0_i32 = arith.constant 0 : i32
    %c0_i32_0 = arith.constant 0 : i32
    %c0_i32_1 = arith.constant 0 : i32
    return %c0_i32, %c0_i32_0 : i32, i32
  }
  func.func @transform_4(%arg0: i32) -> (i32, i32) {
    %c0_i32 = arith.constant 0 : i32
    %c0_i32_0 = arith.constant 0 : i32
    %c0_i32_1 = arith.constant 0 : i32
    return %c0_i32, %c0_i32_0 : i32, i32
  }
  func.func @transform_5(%arg0: i32) -> (i32, i32) {
    %c0_i32 = arith.constant 0 : i32
    %c0_i32_0 = arith.constant 0 : i32
    return %arg0, %c0_i32 : i32, i32
  }
}

</mosaic_0001>

<bundles_post_ra>
// kernel: gpt2_mlp.1
= control target key start
LH: loop header
LB: loop body
LE: loop exit
PB: predicated region body
PF: predicated region fallthrough
CT: control target
= control target key end

     0   :  { %v338_v1 = vmov 0.0   ;;  %vm339_vm0 = vmmov 0   ;;  %vm48_vm1 = vcmask 261120   ;;  %s430_s0 = inlined_call_operand.vmem [shape: f32[16,32], index: 0, kind: input, shape index: {}]   ;;  %s431_s1 = inlined_call_operand.vmem [shape: bf16[32,128], index: 1, kind: input, shape index: {}]   ;;  %s432_s2 = inlined_call_operand.vmem [shape: f32[1,128], index: 2, kind: input, shape index: {}]   ;;  %s433_s3 = inlined_call_operand.vmem [shape: bf16[128,32], index: 3, kind: input, shape index: {}]   ;;  %s434_s4 = inlined_call_operand.vmem [shape: f32[1,32], index: 4, kind: input, shape index: {}]   ;;  %s435_s5 = inlined_call_operand.hbm [shape: f32[16,32], index: 5, kind: output, shape index: {}]  }
   0x1   :  { %v300_v0 = vld [vmem:[%s431_s1] sm:$0xff]   ;;  %267 = vmatprep.subr.bf16.mxu0 %v338_v1  ;;  %275 = vmatprep.subr.bf16.mxu1 %v338_v1  ;;  %v301_v2 = vld [vmem:[%s431_s1 + $0x8] sm:$0xff]  }
   0x2   :  { %268 = vmatpush3.bf16.msra.mxu0 %v300_v0  ;;  %271 = vmatprep.mubr.msk.bf16.mxu0 %vm339_vm0, %v338_v1  ;;  %v22_v3 = vld [vmem:[%s430_s0] sm:$0xff]  ;;  %v23_v4 = vld [vmem:[%s430_s0 + $0x8] sm:$0xff] }
   0x3   :  { %269 = vmatprep.subr.bf16.mxu0 %v338_v1  ;;  %291 = vmatprep.mubr.msk.bf16.mxu1 %vm339_vm0, %v338_v1  ;;  %v24_v5 = vpack.c.bf16 %v23_v4, %v22_v3 }
   0x6   :  { %270 = vmatpush3.bf16.msra.mxu0 %v301_v2 }
   0x7   :  { %10 = vsyncpa [#allocation3], 0  ;;  %v302_v6 = vld [vmem:[%s433_s3] sm:$0xff]   ;;  %v303_v7 = vld [vmem:[%s433_s3 + $0x8] sm:$0xff]   ;;  %s340_s17 = smov [#allocation2]  }
   0x8   :  { %276 = vmatpush3.bf16.msra.mxu1 %v302_v6  ;;  %v304_v8 = vld [vmem:[%s433_s3 + $0x10] sm:$0xff]   ;;  %v305_v9 = vld [vmem:[%s433_s3 + $0x18] sm:$0xff]   ;;  %v306_v10 = vld [vmem:[%s433_s3 + $0x20] sm:$0xff]   ;;  %s231_s18 = sshll.u32 %s340_s17, 4  ;;  %s232_s18 = int_to_ptr.vmem [resolvable:$true] %s231_s18 }
   0x9   :  { %272 = vmatmul.mubr.msk.bf16.vlgmr.msra.gmra.mrb[0].mxu0 %vm48_vm1, %v24_v5  ;;  %277 = vmatprep.subr.bf16.mxu1 %v338_v1  ;;  %v307_v11 = vld [vmem:[%s433_s3 + $0x28] sm:$0xff]   ;;  %v308_v12 = vld [vmem:[%s433_s3 + $0x30] sm:$0xff]   ;;  %v309_v13 = vld [vmem:[%s433_s3 + $0x38] sm:$0xff]   ;;  %s314_s19 = scalar_lea.vmem %s232_s18, 256  ;;  %p319_p1 = scmp.lt.s32.totalorder %s232_s18, %s232_s18 }
   0xa   :  { %v242_v14 = vld [vmem:[%s432_s2] ss:$0 sm:$0xff]  ;;  %p315_p0 = scmp.ne.s32.totalorder %s232_s18, %s314_s19  ;;  %p320_p2 = scmp.lt.s32.totalorder %s314_s19, %s314_s19 }
   0xb   :  { %v246_v40 = vld [vmem:[%s434_s4] ss:$0 sm:$0xff] }
   0xc   :  { %278 = vmatpush3.bf16.msra.mxu1 %v303_v7  ;;  %p321_p3 = por %p320_p2, %p319_p1 }
   0xd   :  { %279 = vmatprep.subr.bf16.mxu1 %v338_v1 }
   0xe   :  { %p322_p4 = pnand %p321_p3, %p315_p0 }
  0x10   :  { %280 = vmatpush3.bf16.msra.mxu1 %v304_v8 }
  0x11   :  { %281 = vmatprep.subr.bf16.mxu1 %v338_v1 }
  0x14   :  { %282 = vmatpush3.bf16.msra.mxu1 %v305_v9 }
  0x15   :  { %283 = vmatprep.subr.bf16.mxu1 %v338_v1 }
  0x18   :  { %284 = vmatpush3.bf16.msra.mxu1 %v306_v10 }
  0x19   :  { %285 = vmatprep.subr.bf16.mxu1 %v338_v1 }
  0x1c   :  { %286 = vmatpush3.bf16.msra.mxu1 %v307_v11 }
  0x1d   :  { %287 = vmatprep.subr.bf16.mxu1 %v338_v1 }
  0x20   :  { %288 = vmatpush3.bf16.msra.mxu1 %v308_v12 }
  0x21   :  { %289 = vmatprep.subr.bf16.mxu1 %v338_v1 }
  0x24   :  { %290 = vmatpush3.bf16.msra.mxu1 %v309_v13 }
  0xdc   :  { %v86_v15 = vpop.f32.mrb[0].mxu0 }
  0xdd   :  { %v87_v16 = vadd.f32 %v242_v14, %v86_v15  ;;  %v273_v17 = vpop.f32.mrb[1].mxu0 }
  0xde   :  { %v89_v18 = vpop.f32.mrb[2].mxu0 }
  0xdf   :  { %v95_v19 = vmul.f32 %v87_v16, %v87_v16  ;;  %v90_v20 = vadd.f32 %v242_v14, %v89_v18  ;;  %v274_v21 = vpop.f32.mrb[3].mxu0  ;;  %v93_v34 = vmul.f32 0.5, %v87_v16 }
  0xe1   :  { %v97_v22 = vmul.f32 %v95_v19, %v87_v16  ;;  %v96_v23 = vmul.f32 %v90_v20, %v90_v20  ;;  %v94_v35 = vmul.f32 0.5, %v90_v20 }
  0xe3   :  { %v99_v24 = vmul.f32 0.044715, %v97_v22  ;;  %v98_v25 = vmul.f32 %v96_v23, %v90_v20 }
  0xe5   :  { %v101_v26 = vadd.f32 %v99_v24, %v87_v16  ;;  %v100_v27 = vmul.f32 0.044715, %v98_v25 }
  0xe7   :  { %v103_v28 = vmul.f32 0.7978846, %v101_v26  ;;  %v102_v29 = vadd.f32 %v100_v27, %v90_v20 }
  0xe9   :  { %310 = vtanh.f32 %v103_v28  ;;  %v104_v30 = vmul.f32 0.7978846, %v102_v29 }
  0xeb   :  { %312 = vtanh.f32 %v104_v30 }
  0xf3   :  { %v311_v31 = vpop.eup %310 }
  0xf4   :  { %v107_v32 = vadd.f32 1.0, %v311_v31 }
  0xf5   :  { %v313_v33 = vpop.eup %312 }
  0xf6   :  { %v108_v36 = vadd.f32 1.0, %v313_v33  ;;  %v109_v37 = vmul.f32 %v107_v32, %v93_v34 }
  0xf8   :  { %v110_v38 = vmul.f32 %v108_v36, %v94_v35 }
  0xfa   :  { %v111_v39 = vpack.c.bf16 %v110_v38, %v109_v37 }
  0xfc   :  { %292 = vmatmul.mubr.bf16.vlgmr.msra.gmra.mrb[0].mxu1 %v111_v39 }
 0x1cf   :  { %v217_v41 = vpop.f32.mrb[0].mxu1 }
 0x1d0   :  { %v218_v42 = vadd.f32 %v246_v40, %v217_v41  ;;  %v293_v43 = vpop.f32.mrb[1].mxu1 }
 0x1d1   :  { %v220_v44 = vpop.f32.mrb[2].mxu1 }
 0x1d2   :  { %224 = vst.msk [vmem:[#allocation2] sm:$0xff] %vm48_vm1, %v218_v42  ;;  %v221_v45 = vadd.f32 %v246_v40, %v220_v44  ;;  %v294_v46 = vpop.f32.mrb[3].mxu1 }
 0x1d4   :  { %225 = vst.msk [vmem:[#allocation2 + $0x8] sm:$0xff] %vm48_vm1, %v221_v45 }
 0x1d5   :  { %325 = shalt.err (!%p322_p4)
}
 0x1d6   :  { %s326_s21 = scalar_lea.hbm %s435_s5, 256 }
 0x1d7   :  { %p327_p5 = scmp.ne.s32.totalorder %s435_s5, %s326_s21  ;;  %p330_p6 = scmp.lt.u32.totalorder %s326_s21, %s435_s5 }
 0x1d9   :  { %p332_p7 = pnand %p330_p6, %p327_p5 }
 0x1db   :  { %335 = shalt.err (!%p332_p7)
}
 0x1dc   :  { %s341_s26 = smov 128   ;;  %s342_s1 = smov 8  }
 0x1dd   :  { %237 = dma.vmem_to_hbm [thread:$0]  %s232_s18, 256, %s435_s5, [#allocation3], %s341_s26, %s341_s26, %s342_s1  }
 0x1de   :  { %336 = dma.done.wait [#allocation3], 256  }
 0x1df   :  { %337 = vsyncadd [#allocation3], 4294967040 }
 0x1e0   :  { %241 = vsyncpa [#allocation3], 1 }

</bundles_post_ra>
